<compile_context>
chip_gen: v5e
topology: v5e:2x2
jax: 0.10.0
libtpu: 0.0.40
codegen_flags: <defaults>
</compile_context>

<pallas_src>
import functools

import numpy as np
import jax
import jax.numpy as jnp
from jax.experimental import pallas as pl
from jax.experimental.pallas import tpu as pltpu

# 9 unique spatial shifts (di, dj) in {-1, 0, +1}^2 of the (zero-padded) input.
SHIFTS = tuple((di, dj) for di in (-1, 0, 1) for dj in (-1, 0, 1))

# kernel index used by output parity p for input shift d (transposed conv, k=4, s=2, pad=1):
#   oh = 2a + p gets contributions from input row a + d with kernel row kh = KH_OF[(p, d)].
KH_OF = {(0, 0): 1, (0, -1): 3, (1, 0): 2, (1, 1): 0}


def upsample_kernel(x_ref, w_ref, b_ref, out_ref, patch_ref, *, H, W, C):
    # x_ref    : (1, C, H*W)   flat NCHW input for one image (lane dim = H*W)
    # w_ref    : (4C, 9C)      folded weights  [parity*C + co, shift*C + ci]
    # b_ref    : (4C, 1)       bias tiled over the 4 parities
    # out_ref  : (1, 4C, H*W)  parity planes   [parity*C + co, a*W + b]
    # patch_ref: (9C, H*W)     VMEM scratch: the 9 shifted copies stacked along K
    HW = H * W
    xf = x_ref[0]                                              # (C, HW)

    # zero-padded flat buffer: W+1 zeros | data | W+1 zeros  -> every (di, dj) shift is a slice
    zpad = jnp.zeros((C, W + 1), xf.dtype)
    xpf = jnp.concatenate([zpad, xf, zpad], axis=-1)           # (C, HW + 2W + 2)

    # column index b = k mod W, used to mask the wrap-around of +/-1 shifts along W
    col = jax.lax.broadcasted_iota(jnp.int32, (C, HW), 1) % W

    for s, (di, dj) in enumerate(SHIFTS):
        off = (di + 1) * W + (dj + 1)
        piece = xpf[:, off:off + HW]                           # (C, HW): x[ci, a+di, b+dj] (padded)
        if dj == -1:
            piece = jnp.where(col >= 1, piece, 0.0)
        elif dj == 1:
            piece = jnp.where(col <= W - 2, piece, 0.0)
        patch_ref[s * C:(s + 1) * C, :] = piece

    # single folded matmul: M = 4C (parity x out-channel), K = 9C (shift x in-channel), N = H*W
    acc = jnp.dot(w_ref[...], patch_ref[...],
                  preferred_element_type=jnp.float32)          # (4C, HW)
    out_ref[0] = (acc + b_ref[...]).astype(out_ref.dtype)


def _fold_weights(weight, C):
    """ConvTranspose2d weight (Cin, Cout, 4, 4) -> (4C, 9C) folded matrix."""
    blocks = []
    for p in range(2):
        for q in range(2):
            row = []
            for (di, dj) in SHIFTS:
                if (p, di) in KH_OF and (q, dj) in KH_OF:
                    kh, kw = KH_OF[(p, di)], KH_OF[(q, dj)]
                    row.append(weight[:, :, kh, kw].T)         # (co, ci)
                else:
                    row.append(jnp.zeros((C, C), weight.dtype))
            blocks.append(jnp.concatenate(row, axis=1))        # (C, 9C)
    return jnp.concatenate(blocks, axis=0)                     # (4C, 9C)


def upsample(x_nchw, weight, bias):
    """x_nchw: (N, C, H, W); weight: (Cin, Cout, 4, 4); bias: (Cout,) -> (N, C, 2H, 2W)."""
    N, C, H, W = x_nchw.shape
    HW = H * W

    x_flat = x_nchw.reshape(N, C, HW)                          # free reshape, no HBM pass
    w_big = _fold_weights(weight, C).astype(jnp.float32)       # (4C, 9C), built once at trace time
    b_big = jnp.tile(bias.astype(jnp.float32), 4).reshape(4 * C, 1)

    out_flat = pl.pallas_call(
        functools.partial(upsample_kernel, H=H, W=W, C=C),
        out_shape=jax.ShapeDtypeStruct((N, 4 * C, HW), jnp.float32),
        grid_spec=pltpu.PrefetchScalarGridSpec(
            num_scalar_prefetch=0,
            grid=(N,),
            in_specs=[
                pl.BlockSpec((1, C, HW), lambda n: (n, 0, 0)),
                pl.BlockSpec((4 * C, 9 * C), lambda n: (0, 0)),
                pl.BlockSpec((4 * C, 1), lambda n: (0, 0)),
            ],
            out_specs=pl.BlockSpec((1, 4 * C, HW), lambda n: (n, 0, 0)),
            scratch_shapes=[pltpu.VMEM((9 * C, HW), jnp.float32)],
        ),
        compiler_params=pltpu.CompilerParams(
            dimension_semantics=("parallel",)),
    )(x_flat, w_big, b_big)

    # interleave the 4 parity planes: out[n, co, 2a+p, 2b+q] = out_flat[n, (2p+q)*C + co, a*W + b]
    o = out_flat.reshape(N, 2, 2, C, H, W)                     # [n, p, q, co, a, b]
    o = jnp.transpose(o, (0, 3, 4, 1, 5, 2))                   # [n, co, a, p, b, q]
    return o.reshape(N, C, 2 * H, 2 * W)


def default_init_jax(key, shape, scale=1.0, in_axis=1, out_axis=0):
    """variance_scaling(scale, 'fan_avg', 'uniform') as in the PyTorch module."""
    rf = np.prod(shape) / shape[in_axis] / shape[out_axis]
    fan_in = shape[in_axis] * rf
    fan_out = shape[out_axis] * rf
    variance = scale / ((fan_in + fan_out) / 2.0)
    bound = float(np.sqrt(3.0 * variance))
    return jax.random.uniform(key, shape, jnp.float32, -bound, bound)


if __name__ == "__main__":
    N, C, H, W = 2, 4, 16, 16
    key = jax.random.PRNGKey(0)
    k_x, k_w = jax.random.split(key)
    x = jax.random.normal(k_x, (N, C, H, W), jnp.float32)
    weight = default_init_jax(k_w, (C, C, 4, 4))   # ConvTranspose2d weight: (Cin, Cout, kH, kW)
    bias = jnp.zeros((C,), jnp.float32)            # nn.init.zeros_

    out = jax.jit(upsample)(x, weight, bias)
    out = jax.block_until_ready(out)

    # numpy reference implementing ConvTranspose2d(k=4, s=2, p=1) semantics directly
    xn, wn, bn = np.asarray(x), np.asarray(weight), np.asarray(bias)
    ref = np.zeros((N, C, 2 * H, 2 * W), np.float32)
    for kh in range(4):
        for kw in range(4):
            contrib = np.einsum('nchw,cd->ndhw', xn, wn[:, :, kh, kw])
            for ih in range(H):
                oh = 2 * ih - 1 + kh
                if not (0 <= oh < 2 * H):
                    continue
                for iw in range(W):
                    ow = 2 * iw - 1 + kw
                    if not (0 <= ow < 2 * W):
                        continue
                    ref[:, :, oh, ow] += contrib[:, :, ih, iw]
    ref += bn[None, :, None, None]

    assert out.shape == (N, C, 2 * H, 2 * W), out.shape
    np.testing.assert_allclose(np.asarray(out), ref, atol=1e-4, rtol=1e-4)
    print("KERNEL_OK")
</pallas_src>

<mosaic_0001>
module attributes {stable_mosaic.version = 11 : i64} {
  func.func @upsample_kernel(%arg0: i32, %arg1: memref<1x4x256xf32, #tpu.memory_space<vmem>>, %arg2: memref<16x36xf32, #tpu.memory_space<vmem>>, %arg3: memref<16x1xf32, #tpu.memory_space<vmem>>, %arg4: memref<1x16x256xf32, #tpu.memory_space<vmem>>, %arg5: memref<36x256xf32, #tpu.memory_space<vmem>>) attributes {dimension_semantics = [#tpu.dimension_semantics<parallel>], iteration_bounds = array<i64: 2>, scalar_prefetch = 0 : i64, scratch_operands = 1 : i64, tpu.core_type = #tpu.core_type<tc>, window_params = [{transform_indices = @transform_0, window_bounds = array<i64: 1, 4, 256>}, {pipeline_mode = #tpu.pipeline_mode<synchronous>, transform_indices = @transform_1, window_bounds = array<i64: 16, 36>}, {pipeline_mode = #tpu.pipeline_mode<synchronous>, transform_indices = @transform_2, window_bounds = array<i64: 16, 1>}, {transform_indices = @transform_3, window_bounds = array<i64: 1, 16, 256>}]} {
    %c0 = arith.constant 0 : index
    %c0_0 = arith.constant 0 : index
    %c0_1 = arith.constant 0 : index
    %0 = vector.load %arg1[%c0, %c0_0, %c0_1] : memref<1x4x256xf32, #tpu.memory_space<vmem>>, vector<1x4x256xf32>
    %1 = vector.shape_cast %0 : vector<1x4x256xf32> to vector<4x256xf32>
    %cst = arith.constant 0.000000e+00 : f32
    %2 = vector.broadcast %cst : f32 to vector<4x17xf32>
    %3 = tpu.concatenate %2, %1, %2 in 1 : vector<4x17xf32>, vector<4x256xf32>, vector<4x17xf32> -> vector<4x290xf32>
    %4 = tpu.iota {dimensions = array<i32: 1>} : vector<4x256xi32>
    %c16_i32 = arith.constant 16 : i32
    %c0_i32 = arith.constant 0 : i32
    %5 = arith.cmpi eq, %c16_i32, %c0_i32 : i32
    %c1_i32 = arith.constant 1 : i32
    %6 = arith.select %5, %c1_i32, %c16_i32 : i32
    %7 = vector.broadcast %6 : i32 to vector<4x256xi32>
    %8 = arith.remsi %4, %7 : vector<4x256xi32>
    %c0_i32_2 = arith.constant 0 : i32
    %9 = vector.broadcast %c0_i32_2 : i32 to vector<4x256xi32>
    %10 = arith.cmpi ne, %8, %9 : vector<4x256xi32>
    %c0_i32_3 = arith.constant 0 : i32
    %11 = vector.broadcast %c0_i32_3 : i32 to vector<4x256xi32>
    %12 = arith.cmpi slt, %8, %11 : vector<4x256xi32>
    %c0_i32_4 = arith.constant 0 : i32
    %13 = arith.cmpi slt, %6, %c0_i32_4 : i32
    %14 = vector.broadcast %13 : i1 to vector<4x256xi1>
    %15 = vector.broadcast %14 : vector<4x256xi1> to vector<4x256xi1>
    %16 = arith.xori %12, %15 : vector<4x256xi1>
    %17 = arith.andi %16, %10 : vector<4x256xi1>
    %18 = vector.broadcast %6 : i32 to vector<4x256xi32>
    %19 = arith.addi %8, %18 : vector<4x256xi32>
    %20 = arith.select %17, %19, %8 : vector<4x256xi1>, vector<4x256xi32>
    %21 = vector.extract_strided_slice %3 {offsets = [0, 0], sizes = [4, 256], strides = [1, 1]} : vector<4x290xf32> to vector<4x256xf32>
    %c1_i32_5 = arith.constant 1 : i32
    %22 = vector.broadcast %c1_i32_5 : i32 to vector<4x256xi32>
    %23 = arith.cmpi sge, %20, %22 : vector<4x256xi32>
    %cst_6 = arith.constant 0.000000e+00 : f32
    %24 = vector.broadcast %cst_6 : f32 to vector<4x256xf32>
    %25 = arith.select %23, %21, %24 : vector<4x256xi1>, vector<4x256xf32>
    %c0_7 = arith.constant 0 : index
    %c0_8 = arith.constant 0 : index
    %26 = vector.load %arg5[%c0_7, %c0_8] : memref<36x256xf32, #tpu.memory_space<vmem>>, vector<4x256xf32>
    tpu.vector_store %arg5[%c0_7, %c0_8], %25 {strides = array<i32>} : memref<36x256xf32, #tpu.memory_space<vmem>>, vector<4x256xf32>,
    %27 = vector.extract_strided_slice %3 {offsets = [0, 1], sizes = [4, 256], strides = [1, 1]} : vector<4x290xf32> to vector<4x256xf32>
    %c4 = arith.constant 4 : index
    %c0_9 = arith.constant 0 : index
    %28 = vector.load %arg5[%c4, %c0_9] : memref<36x256xf32, #tpu.memory_space<vmem>>, vector<4x256xf32>
    tpu.vector_store %arg5[%c4, %c0_9], %27 {strides = array<i32>} : memref<36x256xf32, #tpu.memory_space<vmem>>, vector<4x256xf32>,
    %29 = vector.extract_strided_slice %3 {offsets = [0, 2], sizes = [4, 256], strides = [1, 1]} : vector<4x290xf32> to vector<4x256xf32>
    %c14_i32 = arith.constant 14 : i32
    %30 = vector.broadcast %c14_i32 : i32 to vector<4x256xi32>
    %31 = arith.cmpi sle, %20, %30 : vector<4x256xi32>
    %cst_10 = arith.constant 0.000000e+00 : f32
    %32 = vector.broadcast %cst_10 : f32 to vector<4x256xf32>
    %33 = arith.select %31, %29, %32 : vector<4x256xi1>, vector<4x256xf32>
    %c8 = arith.constant 8 : index
    %c0_11 = arith.constant 0 : index
    %34 = vector.load %arg5[%c8, %c0_11] : memref<36x256xf32, #tpu.memory_space<vmem>>, vector<4x256xf32>
    tpu.vector_store %arg5[%c8, %c0_11], %33 {strides = array<i32>} : memref<36x256xf32, #tpu.memory_space<vmem>>, vector<4x256xf32>,
    %35 = vector.extract_strided_slice %3 {offsets = [0, 16], sizes = [4, 256], strides = [1, 1]} : vector<4x290xf32> to vector<4x256xf32>
    %c1_i32_12 = arith.constant 1 : i32
    %36 = vector.broadcast %c1_i32_12 : i32 to vector<4x256xi32>
    %37 = arith.cmpi sge, %20, %36 : vector<4x256xi32>
    %cst_13 = arith.constant 0.000000e+00 : f32
    %38 = vector.broadcast %cst_13 : f32 to vector<4x256xf32>
    %39 = arith.select %37, %35, %38 : vector<4x256xi1>, vector<4x256xf32>
    %c12 = arith.constant 12 : index
    %c0_14 = arith.constant 0 : index
    %40 = vector.load %arg5[%c12, %c0_14] : memref<36x256xf32, #tpu.memory_space<vmem>>, vector<4x256xf32>
    tpu.vector_store %arg5[%c12, %c0_14], %39 {strides = array<i32>} : memref<36x256xf32, #tpu.memory_space<vmem>>, vector<4x256xf32>,
    %41 = vector.extract_strided_slice %3 {offsets = [0, 17], sizes = [4, 256], strides = [1, 1]} : vector<4x290xf32> to vector<4x256xf32>
    %c16 = arith.constant 16 : index
    %c0_15 = arith.constant 0 : index
    %42 = vector.load %arg5[%c16, %c0_15] : memref<36x256xf32, #tpu.memory_space<vmem>>, vector<4x256xf32>
    tpu.vector_store %arg5[%c16, %c0_15], %41 {strides = array<i32>} : memref<36x256xf32, #tpu.memory_space<vmem>>, vector<4x256xf32>,
    %43 = vector.extract_strided_slice %3 {offsets = [0, 18], sizes = [4, 256], strides = [1, 1]} : vector<4x290xf32> to vector<4x256xf32>
    %c14_i32_16 = arith.constant 14 : i32
    %44 = vector.broadcast %c14_i32_16 : i32 to vector<4x256xi32>
    %45 = arith.cmpi sle, %20, %44 : vector<4x256xi32>
    %cst_17 = arith.constant 0.000000e+00 : f32
    %46 = vector.broadcast %cst_17 : f32 to vector<4x256xf32>
    %47 = arith.select %45, %43, %46 : vector<4x256xi1>, vector<4x256xf32>
    %c20 = arith.constant 20 : index
    %c0_18 = arith.constant 0 : index
    %48 = vector.load %arg5[%c20, %c0_18] : memref<36x256xf32, #tpu.memory_space<vmem>>, vector<4x256xf32>
    tpu.vector_store %arg5[%c20, %c0_18], %47 {strides = array<i32>} : memref<36x256xf32, #tpu.memory_space<vmem>>, vector<4x256xf32>,
    %49 = vector.extract_strided_slice %3 {offsets = [0, 32], sizes = [4, 256], strides = [1, 1]} : vector<4x290xf32> to vector<4x256xf32>
    %c1_i32_19 = arith.constant 1 : i32
    %50 = vector.broadcast %c1_i32_19 : i32 to vector<4x256xi32>
    %51 = arith.cmpi sge, %20, %50 : vector<4x256xi32>
    %cst_20 = arith.constant 0.000000e+00 : f32
    %52 = vector.broadcast %cst_20 : f32 to vector<4x256xf32>
    %53 = arith.select %51, %49, %52 : vector<4x256xi1>, vector<4x256xf32>
    %c24 = arith.constant 24 : index
    %c0_21 = arith.constant 0 : index
    %54 = vector.load %arg5[%c24, %c0_21] : memref<36x256xf32, #tpu.memory_space<vmem>>, vector<4x256xf32>
    tpu.vector_store %arg5[%c24, %c0_21], %53 {strides = array<i32>} : memref<36x256xf32, #tpu.memory_space<vmem>>, vector<4x256xf32>,
    %55 = vector.extract_strided_slice %3 {offsets = [0, 33], sizes = [4, 256], strides = [1, 1]} : vector<4x290xf32> to vector<4x256xf32>
    %c28 = arith.constant 28 : index
    %c0_22 = arith.constant 0 : index
    %56 = vector.load %arg5[%c28, %c0_22] : memref<36x256xf32, #tpu.memory_space<vmem>>, vector<4x256xf32>
    tpu.vector_store %arg5[%c28, %c0_22], %55 {strides = array<i32>} : memref<36x256xf32, #tpu.memory_space<vmem>>, vector<4x256xf32>,
    %57 = vector.extract_strided_slice %3 {offsets = [0, 34], sizes = [4, 256], strides = [1, 1]} : vector<4x290xf32> to vector<4x256xf32>
    %c14_i32_23 = arith.constant 14 : i32
    %58 = vector.broadcast %c14_i32_23 : i32 to vector<4x256xi32>
    %59 = arith.cmpi sle, %20, %58 : vector<4x256xi32>
    %cst_24 = arith.constant 0.000000e+00 : f32
    %60 = vector.broadcast %cst_24 : f32 to vector<4x256xf32>
    %61 = arith.select %59, %57, %60 : vector<4x256xi1>, vector<4x256xf32>
    %c32 = arith.constant 32 : index
    %c0_25 = arith.constant 0 : index
    %62 = vector.load %arg5[%c32, %c0_25] : memref<36x256xf32, #tpu.memory_space<vmem>>, vector<4x256xf32>
    tpu.vector_store %arg5[%c32, %c0_25], %61 {strides = array<i32>} : memref<36x256xf32, #tpu.memory_space<vmem>>, vector<4x256xf32>,
    %c0_26 = arith.constant 0 : index
    %c0_27 = arith.constant 0 : index
    %63 = vector.load %arg2[%c0_26, %c0_27] : memref<16x36xf32, #tpu.memory_space<vmem>>, vector<16x36xf32>
    %c0_28 = arith.constant 0 : index
    %c0_29 = arith.constant 0 : index
    %64 = vector.load %arg5[%c0_28, %c0_29] : memref<36x256xf32, #tpu.memory_space<vmem>>, vector<36x256xf32>
    %cst_30 = arith.constant dense<0.000000e+00> : vector<16x256xf32>
    %65 = tpu.matmul %63, %64, %cst_30 {dimension_numbers = #tpu.dot_dimension_numbers<[1], [0], [0], [1], [0, 0, 1, 1], [], []>} : vector<16x36xf32>, vector<36x256xf32>, vector<16x256xf32> -> vector<16x256xf32>
    %c0_31 = arith.constant 0 : index
    %c0_32 = arith.constant 0 : index
    %66 = vector.load %arg3[%c0_31, %c0_32] : memref<16x1xf32, #tpu.memory_space<vmem>>, vector<16x1xf32>
    %67 = vector.broadcast %66 : vector<16x1xf32> to vector<16x256xf32>
    %68 = arith.addf %65, %67 : vector<16x256xf32>
    %c0_33 = arith.constant 0 : index
    %c0_34 = arith.constant 0 : index
    %c0_35 = arith.constant 0 : index
    %69 = vector.load %arg4[%c0_33, %c0_34, %c0_35] : memref<1x16x256xf32, #tpu.memory_space<vmem>>, vector<1x16x256xf32>
    %70 = vector.shape_cast %69 : vector<1x16x256xf32> to vector<16x256xf32>
    %71 = vector.shape_cast %68 : vector<16x256xf32> to vector<1x16x256xf32>
    tpu.vector_store %arg4[%c0_33, %c0_34, %c0_35], %71 {strides = array<i32>} : memref<1x16x256xf32, #tpu.memory_space<vmem>>, vector<1x16x256xf32>,
    return
  }
  func.func @transform_0(%arg0: i32) -> (i32, i32, i32) {
    %c0_i32 = arith.constant 0 : i32
    %c0_i32_0 = arith.constant 0 : i32
    %c0_i32_1 = arith.constant 0 : i32
    return %arg0, %c0_i32, %c0_i32_0 : i32, i32, i32
  }
  func.func @transform_1(%arg0: i32) -> (i32, i32) {
    %c0_i32 = arith.constant 0 : i32
    %c0_i32_0 = arith.constant 0 : i32
    %c0_i32_1 = arith.constant 0 : i32
    return %c0_i32, %c0_i32_0 : i32, i32
  }
  func.func @transform_2(%arg0: i32) -> (i32, i32) {
    %c0_i32 = arith.constant 0 : i32
    %c0_i32_0 = arith.constant 0 : i32
    %c0_i32_1 = arith.constant 0 : i32
    return %c0_i32, %c0_i32_0 : i32, i32
  }
  func.func @transform_3(%arg0: i32) -> (i32, i32, i32) {
    %c0_i32 = arith.constant 0 : i32
    %c0_i32_0 = arith.constant 0 : i32
    %c0_i32_1 = arith.constant 0 : i32
    return %arg0, %c0_i32, %c0_i32_0 : i32, i32, i32
  }
}

</mosaic_0001>

<bundles_post_ra>
// kernel: tile.0
= control target key start
LH: loop header
LB: loop body
LE: loop exit
PB: predicated region body
PF: predicated region fallthrough
CT: control target
= control target key end

     0   :  { %s34_s8 = smov 125   ;;  %s35_s9 = smov 126   ;;  %vm7_vm0 = vcmask 7168   ;;  %s61_s0 = inlined_call_operand.vmem [shape: f32[4,4], index: 0, kind: input, shape index: {}]   ;;  %s62_s1 = inlined_call_operand.vmem [shape: f32[16,1], index: 1, kind: output, shape index: {}]  }
   0x1   :  { %v4_v0 = vld [vmem:[%s61_s0] sm:$0xf]  ;;  %s33_s0 = smov 127  }
   0x2   :  { %5 = vst [vmem:[#allocation0] sm:$0xf] %v4_v0 }
   0x9   :  { %v9_v1 = vld [vmem:[#allocation0] sm:$0xf]  }
   0xa   :  { %v21_v2 = vld [vmem:[#allocation0] sm:$0xf]   ;;  %10 = vrot.lane.b32.xlu0 %v9_v1, %s33_s0 }
   0xb   :  { %22 = vrot.lane.b32.xlu1 %v21_v2, %s34_s8  ;;  %v15_v3 = vld [vmem:[#allocation0] sm:$0xf]  }
   0xc   :  { %v6_v4 = vld [vmem:[#allocation0] sm:$0xf]  }
   0xd   :  { %8 = vst.msk [vmem:[%s62_s1] ss:$4 sm:$0xf] %vm7_vm0, %v6_v4  }
  0x12   :  { %16 = vrot.lane.b32.xlu0 %v15_v3, %s35_s9 }
  0x7c   :  { %v11_v5 = vpop.permute.xlu0 %10  }
  0x7d   :  { %v23_v6 = vpop.permute.xlu1 %22   ;;  %27 = vst.msk [vmem:[%s62_s1 + $0x1] ss:$4 sm:$0xf] %vm7_vm0, %v11_v5  }
  0x7e   :  { %29 = vst.msk [vmem:[%s62_s1 + $0x3] ss:$4 sm:$0xf] %vm7_vm0, %v23_v6  }
  0x84   :  { %v17_v7 = vpop.permute.xlu0 %16  }
  0x85   :  { %28 = vst.msk [vmem:[%s62_s1 + $0x2] ss:$4 sm:$0xf] %vm7_vm0, %v17_v7  }

// kernel: tile.8
= control target key start
LH: loop header
LB: loop body
LE: loop exit
PB: predicated region body
PF: predicated region fallthrough
CT: control target
= control target key end

     0   :  { %s22_s0 = inlined_call_operand.vmem [shape: f32[4], index: 0, kind: input, shape index: {}]   ;;  %s23_s1 = inlined_call_operand.vmem [shape: f32[4,4], index: 1, kind: output, shape index: {}]  }
   0x1   :  { %v4_v0 = vld [vmem:[%s22_s0] ss:$0 sm:$0xff] }
   0x2   :  { %5 = vst [vmem:[%s23_s1] sm:$0xf] %v4_v0 }

// kernel: upsample.1
= control target key start
LH: loop header
LB: loop body
LE: loop exit
PB: predicated region body
PF: predicated region fallthrough
CT: control target
= control target key end

     0   :  { %s583_s12 = smov 0   ;;  %s672_s0 = inlined_call_operand.vmem [shape: f32[2,4,256], index: 0, kind: input, shape index: {}]   ;;  %s673_s1 = inlined_call_operand.vmem [shape: f32[16,36], index: 1, kind: input, shape index: {}]   ;;  %s674_s2 = inlined_call_operand.vmem [shape: f32[16,1], index: 2, kind: input, shape index: {}]   ;;  %s675_s3 = inlined_call_operand.vmem [shape: f32[2,16,256], index: 3, kind: output, shape index: {}]  }
   0x1 LB: > { %s496_s13 = sadd.s32 4294967295, %s551_s12   ;;  %p500_p0 = scmp.ge.s32.totalorder %s551_s12, 1  ;;  %s551_s12 = sphi %s583_s12, %s13_s12  }
   0x2   : > { %p137_p1 = scmp.lt.s32.totalorder %s551_s12, 3 }
   0x4   : > { %p138_p2 = pnand %p500_p0, %p137_p1 }
   0x5   : > { %p161_p3 = scmp.lt.s32.totalorder (!%p138_p2), %s496_s13, 1  ;;  %s553_s18 = smov (!%p138_p2), 17  }
   0x6   : > { %141 = sbr.rel (%p138_p2) target bundleno = 464 (0x1d0), region = 32  ;;  %s554_s19 = smov (!%p138_p2), 94  }
   0x7   : > { %s555_s20 = smov (!%p138_p2), 110   ;;  %s556_s21 = smov (!%p138_p2), 96  }
   0x8   : > { %s557_s22 = smov (!%p138_p2), 112   ;;  %s558_s23 = smov (!%p138_p2), 111  }
   0x9   : > { %s559_s24 = smov (!%p138_p2), 126   ;;  %s560_s25 = smov (!%p138_p2), 95  }
   0xa   : > { %s561_s26 = smov (!%p138_p2), 127  }
   0xb   : > { %s685_s13 = smov (!%p161_p3, %s496_s13), 1  ;;  %v187_v3 = vlaneseq  ;;  %vm180_vm0 = vcmask 138240   ;;  %vm295_vm3 = vcmask 900096   ;;  %vm344_vm5 = vcmask 769024  }
   0xc   : > { %s513_s14 = sshll.u32 %s685_s13, 3  ;;  %vm316_vm7 = vcmask 785408   ;;  %vm384_vm8 = vcmask 1043456   ;;  %vm261_vm9 = vcmask 916480   ;;  %vm282_vm10 = vcmask 908288   ;;  %s514_s8 = sshll.u32 %s685_s13, 5 }
   0xd   : > { %s165_s17 = scalar_lea.vmem %s672_s0, %s513_s14  ;;  %v188_v4 = vand.u32 127, %v187_v3  ;;  %vm246_vm11 = vcmask 1031168   ;;  %v562_v3 = vmov 0   ;;  %vm331_vm12 = vcmask 777216   ;;  %s170_s11 = scalar_lea.vmem %s675_s3, %s514_s8 }
   0xe   : > { %v171_v0 = vld [vmem:[%s165_s17] sm:$0xff]  ;;  %544 = vset.pattern.permute.xlu0 %v562_v3  ;;  %543 = vset.pattern.permute.xlu2 %v562_v3  ;;  %vm231_vm13 = vcmask 1039360   ;;  %vm377_vm14 = vcmask 293888  }
   0xf   : > { %173 = vst [vmem:[#allocation1] ss:$2 sm:$0xff] %v171_v0  ;;  %v194_v5 = vand.u32 15, %v188_v4  ;;  %v189_v6 = vadd.s32 128, %v188_v4 }
  0x11   : > { %vm597_vm1 = vcmp.ge.s32.totalorder %v194_v5, 1  ;;  %v201_v11 = vand.u32 15, %v189_v6  ;;  %vm609_vm4 = vcmp.le.s32.totalorder %v194_v5, 14 }
  0x13   : > { %vm603_vm2 = vcmp.ge.s32.totalorder %v201_v11, 1  ;;  %vm613_vm6 = vcmp.le.s32.totalorder %v201_v11, 14 }
  0x16   : > { %v174_v1 = vld.sshfl [vmem:[#allocation1] sm:$0xff pattern:$0x75316420]  ;;  %v175_v2 = vld.sshfl [vmem:[#allocation1 + $0x8] sm:$0xff pattern:$0x75316420] }
  0x17   : > { %176 = vrot.lane.b32.xlu0 %v174_v1, %s553_s18  ;;  %v366_v1 = vld [vmem:[%s674_s2 + $0x8] sm:$0xff] }
  0x1f   : > { %178 = vrot.lane.b32.xlu0 %v175_v2, %s553_s18  ;;  %v365_v2 = vld [vmem:[%s674_s2] sm:$0xff] }
  0x89   : > { %v177_v8 = vpop.permute.xlu0 %176 }
  0x8a   : > { %v185_v9 = vsel %vm180_vm0, 0.0, %v177_v8 }
  0x8b   : > { %338 = vrot.lane.b32.xlu1 %v185_v9, %s554_s19  ;;  %v216_v10 = vsel %vm597_vm1, %v185_v9, 0.0  ;;  %v222_v18 = vrot.slane %v185_v9, 4 }
  0x8c   : > { %218 = vst [vmem:[#allocation2 + $0x30] sm:$0xf] %v216_v10 }
  0x91   : > { %v179_v13 = vpop.permute.xlu0 %178 }
  0x92   : > { %v181_v14 = vsel %vm180_vm0, %v177_v8, %v179_v13  ;;  %v186_v15 = vsel %vm180_vm0, %v179_v13, 0.0 }
  0x93   : > { %342 = vrot.lane.b32.xlu2 %v186_v15, %s554_s19  ;;  %291 = vrot.lane.b32.xlu0 %v181_v14, %s555_s20  ;;  %v217_v16 = vsel %vm603_vm2, %v181_v14, 0.0  ;;  %v223_v17 = vrot.slane %v181_v14, 4  ;;  %v224_v19 = vrot.slane %v186_v15, 4 }
  0x94   : > { %340 = vrot.lane.b32.xlu1 %v181_v14, %s554_s19  ;;  %219 = vst [vmem:[#allocation2] sm:$0xf] %v217_v16 }
  0x9b   : > { %289 = vrot.lane.b32.xlu2 %v185_v9, %s555_s20  ;;  %312 = vrot.lane.b32.xlu0 %v181_v14, %s556_s21 }
  0x9c   : > { %293 = vrot.lane.b32.xlu1 %v186_v15, %s555_s20 }
  0xa3   : > { %310 = vrot.lane.b32.xlu2 %v185_v9, %s556_s21  ;;  %257 = vrot.lane.b32.xlu0 %v181_v14, %s557_s22 }
  0xa4   : > { %314 = vrot.lane.b32.xlu1 %v186_v15, %s556_s21 }
  0xab   : > { %255 = vrot.lane.b32.xlu2 %v185_v9, %s557_s22  ;;  %278 = vrot.lane.b32.xlu0 %v181_v14, %s558_s23 }
  0xac   : > { %259 = vrot.lane.b32.xlu1 %v186_v15, %s557_s22 }
  0xb3   : > { %276 = vrot.lane.b32.xlu2 %v185_v9, %s558_s23  ;;  %242 = vrot.lane.b32.xlu0 %v181_v14, %s559_s24 }
  0xb4   : > { %280 = vrot.lane.b32.xlu1 %v186_v15, %s558_s23 }
  0xbb   : > { %240 = vrot.lane.b32.xlu2 %v185_v9, %s559_s24  ;;  %327 = vrot.lane.b32.xlu0 %v223_v17, %s560_s25 }
  0xbc   : > { %244 = vrot.lane.b32.xlu1 %v186_v15, %s559_s24 }
  0xc3   : > { %325 = vrot.lane.b32.xlu2 %v222_v18, %s560_s25  ;;  %227 = vrot.lane.b32.xlu0 %v223_v17, %s561_s26 }
  0xc4   : > { %329 = vrot.lane.b32.xlu1 %v224_v19, %s560_s25 }
  0xcb   : > { %225 = vrot.lane.b32.xlu2 %v222_v18, %s561_s26  ;;  %374 = vperm.xlu0 %544, %v366_v1  }
  0xcc   : > { %229 = vrot.lane.b32.xlu1 %v224_v19, %s561_s26 }
  0xd3   : > { %369 = vperm.xlu2 %543, %v365_v2  }
  0xed   : > { %v343_v20 = vpop.permute.xlu2 %342 }
  0xf5   : > { %v290_v21 = vpop.permute.xlu2 %289 }
  0xfd   : > { %v339_v22 = vpop.permute.xlu1 %338  ;;  %v311_v23 = vpop.permute.xlu2 %310 }
 0x105   : > { %v292_v25 = vpop.permute.xlu0 %291  ;;  %v256_v35 = vpop.permute.xlu2 %255 }
 0x106   : > { %v296_v27 = vsel %vm295_vm3, %v290_v21, %v292_v25  ;;  %v341_v28 = vpop.permute.xlu1 %340  ;;  %v353_v21 = vld [vmem:[%s673_s1] sm:$0xff] }
 0x107   : > { %v300_v29 = vsel %vm609_vm4, %v296_v27, 0.0  ;;  %v345_v30 = vsel %vm344_vm5, %v339_v22, %v341_v28  ;;  %v346_v31 = vsel %vm344_vm5, %v341_v28, %v343_v20  ;;  %v354_v20 = vld [vmem:[%s673_s1 + $0x8] sm:$0xff] }
 0x108   : > { %v304_v32 = vrot.slane %v300_v29, 4  ;;  %v349_v33 = vsel %vm609_vm4, %v345_v30, 0.0  ;;  %v350_v34 = vsel %vm613_vm6, %v346_v31, 0.0 }
 0x109   : > { %351 = vst [vmem:[#allocation2 + $0x40] sm:$0xf] %v349_v33 }
 0x10a   : > { %308 = vst [vmem:[#allocation2 + $0x48] sm:$0xf0] %v304_v32 }
 0x10b   : > { %352 = vst [vmem:[#allocation2 + $0x38] sm:$0xf] %v350_v34 }
 0x10d   : > { %v313_v36 = vpop.permute.xlu0 %312  ;;  %v277_v48 = vpop.permute.xlu2 %276 }
 0x10e   : > { %v317_v37 = vsel %vm316_vm7, %v311_v23, %v313_v36  ;;  %v294_v38 = vpop.permute.xlu1 %293 }
 0x10f   : > { %v321_v39 = vsel %vm597_vm1, %v317_v37, 0.0  ;;  %v297_v40 = vsel %vm295_vm3, %v292_v25, %v294_v38 }
 0x110   : > { %323 = vst [vmem:[#allocation2 + $0x8] sm:$0xf] %v321_v39  ;;  %v301_v41 = vsel %vm613_vm6, %v297_v40, 0.0  ;;  %v363_v42 = vld [vmem:[#allocation2 + $0x40] sm:$0xf] }
 0x111   : > { %v305_v43 = vrot.slane %v301_v41, 4  ;;  %505 = vmatpush.msk.msra.mxu0 %vm384_vm8, %v363_v42  ;;  %515 = vmatpush.msk.msra.mxu2 %vm384_vm8, %v363_v42 }
 0x112   : > { %v364_v44 = vld [vmem:[#allocation2 + $0x38] sm:$0xf] }
 0x113   : > { %309 = vst [vmem:[#allocation2 + $0x28] sm:$0xf0] %v305_v43  ;;  %508 = vmatpush.msk.msra.mxu1 %vm384_vm8, %v364_v44  ;;  %520 = vmatpush.msk.msra.mxu3 %vm384_vm8, %v364_v44 }
 0x115   : > { %v258_v45 = vpop.permute.xlu0 %257  ;;  %v241_v58 = vpop.permute.xlu2 %240 }
 0x116   : > { %v262_v46 = vsel %vm261_vm9, %v256_v35, %v258_v45  ;;  %v315_v47 = vpop.permute.xlu1 %314 }
 0x117   : > { %v266_v49 = vsel %vm597_vm1, %v262_v46, 0.0  ;;  %v318_v50 = vsel %vm316_vm7, %v313_v36, %v315_v47 }
 0x118   : > { %v270_v51 = vrot.slane %v266_v49, 4  ;;  %v322_v52 = vsel %vm603_vm2, %v318_v50, 0.0 }
 0x119   : > { %324 = vst [vmem:[#allocation2 + $0x20] sm:$0xf] %v322_v52 }
 0x11a   : > { %274 = vst [vmem:[#allocation2 + $0x18] sm:$0xf0] %v270_v51 }
 0x11d   : > { %v279_v53 = vpop.permute.xlu0 %278  ;;  %v326_v4 = vpop.permute.xlu2 %325 }
 0x11e   : > { %v283_v54 = vsel %vm282_vm10, %v277_v48, %v279_v53  ;;  %v260_v55 = vpop.permute.xlu1 %259 }
 0x11f   : > { %287 = vst [vmem:[#allocation2 + $0x48] sm:$0xf] %v283_v54  ;;  %v263_v56 = vsel %vm261_vm9, %v258_v45, %v260_v55 }
 0x120   : > { %v267_v57 = vsel %vm603_vm2, %v263_v56, 0.0 }
 0x121   : > { %v271_v59 = vrot.slane %v267_v57, 4 }
 0x123   : > { %275 = vst [vmem:[#allocation2 + $0x10] sm:$0xf0] %v271_v59 }
 0x125   : > { %v243_v60 = vpop.permute.xlu0 %242  ;;  %v226_v10 = vpop.permute.xlu2 %225 }
 0x126   : > { %v247_v61 = vsel %vm246_vm11, %v241_v58, %v243_v60  ;;  %v281_v62 = vpop.permute.xlu1 %280  ;;  %v359_v16 = vld [vmem:[#allocation2 + $0x48] sm:$0xff] }
 0x127   : > { %v251_v63 = vsel %vm609_vm4, %v247_v61, 0.0  ;;  %v284_v0 = vsel %vm282_vm10, %v279_v53, %v281_v62 }
 0x128   : > { %253 = vst [vmem:[#allocation2 + $0x18] sm:$0xf] %v251_v63 }
 0x129   : > { %288 = vst [vmem:[#allocation2 + $0x28] sm:$0xf] %v284_v0 }
 0x12d   : > { %v328_v5 = vpop.permute.xlu0 %327  ;;  %v370_v27 = vpop.permute.xlu2 %369 }
 0x12e   : > { %v245_v6 = vpop.permute.xlu1 %244  ;;  %v332_v7 = vsel %vm331_vm12, %v326_v4, %v328_v5 }
 0x12f   : > { %v248_v8 = vsel %vm246_vm11, %v243_v60, %v245_v6  ;;  %336 = vst [vmem:[#allocation2 + $0x8] sm:$0xf0] %v332_v7  ;;  %v357_v17 = vld [vmem:[#allocation2 + $0x18] sm:$0xff] }
 0x130   : > { %v252_v9 = vsel %vm613_vm6, %v248_v8, 0.0  ;;  %v360_v24 = vld [vmem:[#allocation2 + $0x28] sm:$0xff] }
 0x131   : > { %254 = vst [vmem:[#allocation2 + $0x10] sm:$0xf] %v252_v9 }
 0x135   : > { %v228_v11 = vpop.permute.xlu0 %227 }
 0x136   : > { %v330_v12 = vpop.permute.xlu1 %329  ;;  %v232_v13 = vsel %vm231_vm13, %v226_v10, %v228_v11  ;;  %v361_v14 = vld [vmem:[#allocation2 + $0x8] sm:$0xff] }
 0x137   : > { %v333_v15 = vsel %vm331_vm12, %v328_v5, %v330_v12  ;;  %236 = vst [vmem:[#allocation2 + $0x30] sm:$0xf0] %v232_v13  ;;  %403 = vmatpush.msra.mxu0 %v361_v14  ;;  %516 = vmatpush.msra.mxu2 %v361_v14 }
 0x138   : > { %337 = vst [vmem:[#allocation2 + $0x20] sm:$0xf0] %v333_v15  ;;  %v358_v25 = vld [vmem:[#allocation2 + $0x10] sm:$0xff] }
 0x139   : > { %404 = vmatpush.msra.mxu0 %v359_v16  ;;  %517 = vmatpush.msra.mxu2 %v359_v16 }
 0x13b   : > { %405 = vmatpush.msra.mxu0 %v357_v17  ;;  %518 = vmatpush.msra.mxu2 %v357_v17 }
 0x13d   : > { %v375_v30 = vpop.permute.xlu0 %374 }
 0x13e   : > { %v230_v18 = vpop.permute.xlu1 %229  ;;  %v355_v19 = vld [vmem:[#allocation2 + $0x30] sm:$0xff] }
 0x13f   : > { %v233_v22 = vsel %vm231_vm13, %v228_v11, %v230_v18  ;;  %406 = vmatpush.msra.mxu0 %v355_v19  ;;  %519 = vmatpush.msra.mxu2 %v355_v19  ;;  %v362_v23 = vld [vmem:[#allocation2 + $0x20] sm:$0xff] }
 0x140   : > { %237 = vst [vmem:[#allocation2] sm:$0xf0] %v233_v22  ;;  %426 = vmatpush.msra.mxu1 %v362_v23  ;;  %521 = vmatpush.msra.mxu3 %v362_v23 }
 0x141   : > { %507 = vmatmul.msk.f32.vlgmr.msra.gmra.mxu2 %vm377_vm14, %v354_v20  ;;  %506 = vmatmul.msk.f32.vlgmr.msra.gmra.mxu0 %vm377_vm14, %v353_v21 }
 0x142   : > { %427 = vmatpush.msra.mxu1 %v360_v24  ;;  %522 = vmatpush.msra.mxu3 %v360_v24 }
 0x144   : > { %428 = vmatpush.msra.mxu1 %v358_v25  ;;  %523 = vmatpush.msra.mxu3 %v358_v25 }
 0x147   : > { %v356_v26 = vld [vmem:[#allocation2] sm:$0xff] }
 0x148   : > { %429 = vmatpush.msra.mxu1 %v356_v26  ;;  %524 = vmatpush.msra.mxu3 %v356_v26 }
 0x149   : > { %510 = vmatmul.msk.f32.vlgmr.msra.gmra.mxu3 %vm377_vm14, %v354_v20  ;;  %509 = vmatmul.msk.f32.vlgmr.msra.gmra.mxu1 %vm377_vm14, %v353_v21 }
 0x1be   : > { %v408_v28 = vpop.f32.mrf.mxu0 }
 0x1bf   : > { %v409_v29 = vadd.f32 %v408_v28, %v370_v27 }
 0x1c1   : > { %437 = vst [vmem:[%s170_s11] sm:$0xff] %v409_v29 }
 0x1c4   : > { %v411_v31 = vpop.f32.mrf.mxu2 }
 0x1c5   : > { %v412_v32 = vadd.f32 %v411_v31, %v375_v30 }
 0x1c6   : > { %v431_v33 = vpop.f32.mrf.mxu1 }
 0x1c7   : > { %439 = vst [vmem:[%s170_s11 + $0x10] sm:$0xff] %v412_v32  ;;  %v432_v34 = vadd.f32 %v431_v33, %v370_v27 }
 0x1c9   : > { %438 = vst [vmem:[%s170_s11 + $0x8] sm:$0xff] %v432_v34 }
 0x1cc   : > { %v434_v35 = vpop.f32.mrf.mxu3 }
 0x1cd   : > { %v435_v36 = vadd.f32 %v434_v35, %v375_v30 }
 0x1cf   : > { %440 = vst [vmem:[%s170_s11 + $0x18] sm:$0xff] %v435_v36 }
 0x1d0 PF: > { %s13_s12 = sadd.s32 1, %s551_s12  }
 0x1d1   : > { %p10_p4 = scmp.ge.s32.totalorder %s13_s12, 4  }
 0x1d3   :  { %12 = sbr.rel (!%p10_p4) target bundleno = 1 (0x1), region = 62 }

</bundles_post_ra>
